<compile_context>
chip_gen: v6e
topology: v6e:2x2x1
jax: 0.10.0
libtpu: 0.0.40
codegen_flags: <defaults>
</compile_context>

<pallas_src>
import functools

import jax
import jax.numpy as jnp
from jax.experimental import pallas as pl
from jax.experimental.pallas import tpu as pltpu

LANE = 128
SUBLANE = 8


def _round_up(x, m):
    return ((x + m - 1) // m) * m


def _actor_kernel(x_ref, w1_ref, b1_ref, w2_ref, b2_ref, w3_ref, b3_ref,
                  out_ref):
    """One batch tile: three fused matmuls + bias + ReLU."""
    wdt = w1_ref.dtype                      # f32 (bit-parity) or bf16 (MXU-native)
    x = x_ref[...].astype(wdt)              # (TB, S_pad)

    # Note: default f32 MXU precision matched the PyTorch reference to 1e-5;
    # if bit-exact parity is ever required, use lax.dot_general HIGHEST.
    h1 = jnp.dot(x, w1_ref[...], preferred_element_type=jnp.float32)
    h1 = jnp.maximum(h1 + b1_ref[...], 0.0)                    # f32 (TB, H_pad)

    h2 = jnp.dot(h1.astype(wdt), w2_ref[...], preferred_element_type=jnp.float32)
    h2 = jnp.maximum(h2 + b2_ref[...], 0.0)                    # f32 (TB, H_pad)

    out = jnp.dot(h2.astype(wdt), w3_ref[...], preferred_element_type=jnp.float32)
    out_ref[...] = (out + b3_ref[...]).astype(out_ref.dtype)   # (TB, OUT)


def _jax_forward_padded(state, padded_params, action_dim):
    """Pure-JAX path on the padded params (tiny-batch fallback)."""
    w1, b1, w2, b2, w3, b3 = padded_params
    s_pad = w1.shape[0]
    if state.shape[1] < s_pad:
        state = jnp.pad(state, ((0, 0), (0, s_pad - state.shape[1])))
    f32 = jnp.float32
    h1 = jnp.maximum(jnp.dot(state.astype(w1.dtype), w1,
                             preferred_element_type=f32) + b1, 0.0)
    h2 = jnp.maximum(jnp.dot(h1.astype(w2.dtype), w2,
                             preferred_element_type=f32) + b2, 0.0)
    out = jnp.dot(h2.astype(w3.dtype), w3, preferred_element_type=f32) + b3
    out = out[:, : 2 * action_dim]
    return out[:, :action_dim], jnp.clip(out[:, action_dim:], -20.0, 2.0)


def actor_forward(state, padded_params, action_dim, *,
                  batch_tile=1024,
                  lane_dense_output=True,
                  single_buffer_weights=False,
                  small_batch_fallback_rows=0):
    """Pallas forward pass. state: (batch, state_dim) float32.

    padded_params: output of pad_params() (lane-aligned weights, f32 biases).
    Returns (mean, log_std), each (batch, action_dim).
    """
    w1, b1, w2, b2, w3, b3 = padded_params
    batch, state_dim = state.shape
    s_pad = w1.shape[0]
    h_pad = w2.shape[0]
    out_dim = 2 * action_dim

    # Very small batches are dispatch-overhead bound; optionally let XLA's
    # fused path handle them (off by default so the Pallas kernel runs).
    if small_batch_fallback_rows and batch <= small_batch_fallback_rows:
        return _jax_forward_padded(state, padded_params, action_dim)

    # Output width: 128-lane padded slab (unmasked stores) or only the real
    # 2*action_dim lanes (full-array lane exception; ~16x less HBM writeback
    # when action_dim is tiny -- the binding lever on v5e/v6e bandwidth).
    if lane_dense_output:
        out_w = w3.shape[1]
    else:
        out_w = out_dim
        w3 = w3[:, :out_dim]
        b3 = b3[:, :out_dim]

    # Pad state feature dim to match the (zero-)padded W1 rows.
    if state_dim < s_pad:
        state = jnp.pad(state, ((0, 0), (0, s_pad - state_dim)))

    # Batch tiling: multiples of 8 sublanes, up to `batch_tile` rows, and at
    # least 2 grid steps whenever the batch allows it so the "parallel" axis
    # can feed both v7x TensorCores (harmless elsewhere).
    b8 = _round_up(batch, SUBLANE)
    half = _round_up(pl.cdiv(b8, 2), SUBLANE)
    tb = max(SUBLANE, min(batch_tile, half))
    b_pad = _round_up(b8, tb)
    if batch < b_pad:
        state = jnp.pad(state, ((0, b_pad - batch), (0, 0)))

    grid = (b_pad // tb,)

    def resident(shape):
        # Block-invariant operands (weights/biases): constant index_map keeps
        # them VMEM-resident across grid steps. single_buffer_weights=True
        # additionally requests one buffer instead of two -- only worth it
        # when hidden_size is large enough that double-buffered f32 weights
        # threaten v7x's scoped-VMEM budget.
        if single_buffer_weights:
            return pl.BlockSpec(shape, lambda i: (0,) * len(shape),
                                pipeline_mode=pl.Buffered(buffer_count=1))
        return pl.BlockSpec(shape, lambda i: (0,) * len(shape))

    params = (w1, b1, w2, b2, w3, b3)
    weight_bytes = sum(int(p.size) * p.dtype.itemsize for p in params)
    act_tile_bytes = 4 * tb * (s_pad + out_w)
    cost = pl.CostEstimate(
        flops=2 * b_pad * (s_pad * h_pad + h_pad * h_pad + h_pad * out_w),
        transcendentals=0,
        bytes_accessed=4 * b_pad * (s_pad + out_w) + weight_bytes)

    # Scoped-VMEM budget: double-buffered activation tiles + (worst-case
    # double-buffered) resident weights, with headroom; capped at v7x's
    # 64 MiB physical VMEM so the same setting stays portable.
    vmem_needed = 2 * act_tile_bytes + 2 * weight_bytes
    vmem_limit = int(min(64 * 2**20, max(32 * 2**20, 1.5 * vmem_needed)))

    out = pl.pallas_call(
        _actor_kernel,
        out_shape=jax.ShapeDtypeStruct((b_pad, out_w), jnp.float32),
        grid=grid,
        in_specs=[
            pl.BlockSpec((tb, s_pad), lambda i: (i, 0)),   # streamed activations
            resident(w1.shape), resident(b1.shape),        # VMEM-resident weights
            resident(w2.shape), resident(b2.shape),
            resident(w3.shape), resident(b3.shape),
        ],
        out_specs=pl.BlockSpec((tb, out_w), lambda i: (i, 0)),
        compiler_params=pltpu.CompilerParams(
            dimension_semantics=("parallel",),             # v7x: both TCs
            vmem_limit_bytes=vmem_limit),
        cost_estimate=cost,
    )(state, w1, b1, w2, b2, w3, b3)

    # Garbage padded-batch rows and padded lanes are sliced off here; split +
    # clip stay in the wrapper (free in XLA).
    out = out[:batch, :out_dim]
    mean = out[:, :action_dim]
    log_std = jnp.clip(out[:, action_dim:], -20.0, 2.0)
    return mean, log_std


def init_params(key, state_dim, action_dim, hidden_size):
    """Deterministic init mimicking nn.Linear's U(-1/sqrt(fan_in), 1/sqrt(fan_in)).

    Weights stored as (in, out); biases stored as (1, out).
    """
    ks = jax.random.split(key, 6)

    def linear(kw, kb, fan_in, fan_out):
        bound = 1.0 / jnp.sqrt(jnp.float32(fan_in))
        w = jax.random.uniform(kw, (fan_in, fan_out), jnp.float32, -bound, bound)
        b = jax.random.uniform(kb, (1, fan_out), jnp.float32, -bound, bound)
        return w, b

    w1, b1 = linear(ks[0], ks[1], state_dim, hidden_size)
    w2, b2 = linear(ks[2], ks[3], hidden_size, hidden_size)
    w3, b3 = linear(ks[4], ks[5], hidden_size, action_dim * 2)
    return (w1, b1, w2, b2, w3, b3)


def pad_params(params, weights_dtype=jnp.float32):
    """Zero-pad parameters so every matmul lane dim is a multiple of 128.

    Padding is all zeros, so ReLU/bias on padded lanes stays exactly 0 and the
    real output lanes match the unpadded computation.  `weights_dtype`:
    float32 for bit-parity with the reference, or bfloat16 for MXU-native
    inputs (accumulation stays f32 in-kernel; biases stay f32).
    """
    w1, b1, w2, b2, w3, b3 = params
    state_dim, hidden = w1.shape
    out_dim = w3.shape[1]
    s_pad = _round_up(state_dim, SUBLANE)   # sublane-friendly contraction dim
    h_pad = _round_up(hidden, LANE)
    o_pad = _round_up(out_dim, LANE)

    def pad2(a, rows, cols, dtype):
        a = jnp.pad(a, ((0, rows - a.shape[0]), (0, cols - a.shape[1])))
        return a.astype(dtype)

    f32 = jnp.float32
    # TODO(synk): biases could be stacked into one resident buffer to save two
    # DMA descriptors per launch (minor; skipped to keep narrow-output path simple).
    return (
        pad2(w1, s_pad, h_pad, weights_dtype), pad2(b1, 1, h_pad, f32),
        pad2(w2, h_pad, h_pad, weights_dtype), pad2(b2, 1, h_pad, f32),
        pad2(w3, h_pad, o_pad, weights_dtype), pad2(b3, 1, o_pad, f32),
    )


def actor_reference(state, params):
    """Pure-JAX reference (unpadded, f32) for correctness checking."""
    w1, b1, w2, b2, w3, b3 = params
    h1 = jnp.maximum(state @ w1 + b1, 0.0)
    h2 = jnp.maximum(h1 @ w2 + b2, 0.0)
    out = h2 @ w3 + b3
    a = w3.shape[1] // 2
    return out[:, :a], jnp.clip(out[:, a:], -20.0, 2.0)


if __name__ == "__main__":
    state_dim, action_dim, hidden_size = 16, 4, 32

    key = jax.random.PRNGKey(0)
    k_params, k_small, k_big = jax.random.split(key, 3)
    params = init_params(k_params, state_dim, action_dim, hidden_size)
    pp_f32 = pad_params(params)
    pp_bf16 = pad_params(params, weights_dtype=jnp.bfloat16)

    fwd = jax.jit(functools.partial(actor_forward, action_dim=action_dim))
    fwd_narrow = jax.jit(functools.partial(
        actor_forward, action_dim=action_dim, lane_dense_output=False))

    def check(got, want, atol, rtol):
        gm, gs = got
        wm, ws = want
        assert gm.shape == wm.shape and gs.shape == ws.shape
        assert jnp.allclose(gm, wm, atol=atol, rtol=rtol), \
            float(jnp.max(jnp.abs(gm - wm)))
        assert jnp.allclose(gs, ws, atol=atol, rtol=rtol), \
            float(jnp.max(jnp.abs(gs - ws)))
        assert bool(jnp.all(gs >= -20.0)) and bool(jnp.all(gs <= 2.0))

    # (1) small batch (single 8-row tile, no extra batch padding), f32, lane-dense
    state_small = jax.random.normal(k_small, (8, state_dim), jnp.float32)
    out_small = fwd(state_small, pp_f32)
    jax.block_until_ready(out_small)
    check(out_small, actor_reference(state_small, params), 1e-5, 1e-5)

    # (2) larger batch -> grid of 2 parallel steps (v7x: one per TensorCore), f32
    state_big = jax.random.normal(k_big, (512, state_dim), jnp.float32)
    ref_big = actor_reference(state_big, params)
    out_big = fwd(state_big, pp_f32)
    jax.block_until_ready(out_big)
    check(out_big, ref_big, 1e-5, 1e-5)

    # (3) narrow-output variant (stores only 2*action_dim lanes), f32
    out_narrow = fwd_narrow(state_big, pp_f32)
    jax.block_until_ready(out_narrow)
    check(out_narrow, ref_big, 1e-5, 1e-5)

    # (4) bf16-weight / f32-accumulate variant (MXU-native path)
    out_bf16 = fwd(state_big, pp_bf16)
    jax.block_until_ready(out_bf16)
    check(out_bf16, ref_big, 5e-2, 5e-2)

    print("KERNEL_OK")
</pallas_src>

<mosaic_0001>
module attributes {stable_mosaic.version = 11 : i64} {
  func.func @_actor_kernel(%arg0: i32, %arg1: memref<8x16xf32, #tpu.memory_space<vmem>>, %arg2: memref<16x128xf32, #tpu.memory_space<vmem>>, %arg3: memref<1x128xf32, #tpu.memory_space<vmem>>, %arg4: memref<128x128xf32, #tpu.memory_space<vmem>>, %arg5: memref<1x128xf32, #tpu.memory_space<vmem>>, %arg6: memref<128x128xf32, #tpu.memory_space<vmem>>, %arg7: memref<1x128xf32, #tpu.memory_space<vmem>>, %arg8: memref<8x128xf32, #tpu.memory_space<vmem>>) attributes {dimension_semantics = [#tpu.dimension_semantics<parallel>], iteration_bounds = array<i64: 1>, scalar_prefetch = 0 : i64, scratch_operands = 0 : i64, tpu.core_type = #tpu.core_type<tc>, window_params = [{transform_indices = @transform_0, window_bounds = array<i64: 8, 16>}, {pipeline_mode = #tpu.pipeline_mode<synchronous>, transform_indices = @transform_1, window_bounds = array<i64: 16, 128>}, {pipeline_mode = #tpu.pipeline_mode<synchronous>, transform_indices = @transform_2, window_bounds = array<i64: 1, 128>}, {pipeline_mode = #tpu.pipeline_mode<synchronous>, transform_indices = @transform_3, window_bounds = array<i64: 128, 128>}, {pipeline_mode = #tpu.pipeline_mode<synchronous>, transform_indices = @transform_4, window_bounds = array<i64: 1, 128>}, {pipeline_mode = #tpu.pipeline_mode<synchronous>, transform_indices = @transform_5, window_bounds = array<i64: 128, 128>}, {pipeline_mode = #tpu.pipeline_mode<synchronous>, transform_indices = @transform_6, window_bounds = array<i64: 1, 128>}, {transform_indices = @transform_7, window_bounds = array<i64: 8, 128>}]} {
    %c0 = arith.constant 0 : index
    %c0_0 = arith.constant 0 : index
    %0 = vector.load %arg1[%c0, %c0_0] : memref<8x16xf32, #tpu.memory_space<vmem>>, vector<8x16xf32>
    %c0_1 = arith.constant 0 : index
    %c0_2 = arith.constant 0 : index
    %1 = vector.load %arg2[%c0_1, %c0_2] : memref<16x128xf32, #tpu.memory_space<vmem>>, vector<16x128xf32>
    %cst = arith.constant dense<0.000000e+00> : vector<8x128xf32>
    %2 = tpu.matmul %0, %1, %cst {dimension_numbers = #tpu.dot_dimension_numbers<[1], [0], [0], [1], [0, 0, 1, 1], [], []>} : vector<8x16xf32>, vector<16x128xf32>, vector<8x128xf32> -> vector<8x128xf32>
    %c0_3 = arith.constant 0 : index
    %c0_4 = arith.constant 0 : index
    %3 = vector.load %arg3[%c0_3, %c0_4] : memref<1x128xf32, #tpu.memory_space<vmem>>, vector<1x128xf32>
    %4 = vector.broadcast %3 : vector<1x128xf32> to vector<8x128xf32>
    %5 = arith.addf %2, %4 : vector<8x128xf32>
    %cst_5 = arith.constant 0.000000e+00 : f32
    %6 = vector.broadcast %cst_5 : f32 to vector<8x128xf32>
    %7 = arith.maximumf %5, %6 : vector<8x128xf32>
    %c0_6 = arith.constant 0 : index
    %c0_7 = arith.constant 0 : index
    %8 = vector.load %arg4[%c0_6, %c0_7] : memref<128x128xf32, #tpu.memory_space<vmem>>, vector<128x128xf32>
    %cst_8 = arith.constant dense<0.000000e+00> : vector<8x128xf32>
    %9 = tpu.matmul %7, %8, %cst_8 {dimension_numbers = #tpu.dot_dimension_numbers<[1], [0], [0], [1], [0, 0, 1, 1], [], []>} : vector<8x128xf32>, vector<128x128xf32>, vector<8x128xf32> -> vector<8x128xf32>
    %c0_9 = arith.constant 0 : index
    %c0_10 = arith.constant 0 : index
    %10 = vector.load %arg5[%c0_9, %c0_10] : memref<1x128xf32, #tpu.memory_space<vmem>>, vector<1x128xf32>
    %11 = vector.broadcast %10 : vector<1x128xf32> to vector<8x128xf32>
    %12 = arith.addf %9, %11 : vector<8x128xf32>
    %cst_11 = arith.constant 0.000000e+00 : f32
    %13 = vector.broadcast %cst_11 : f32 to vector<8x128xf32>
    %14 = arith.maximumf %12, %13 : vector<8x128xf32>
    %c0_12 = arith.constant 0 : index
    %c0_13 = arith.constant 0 : index
    %15 = vector.load %arg6[%c0_12, %c0_13] : memref<128x128xf32, #tpu.memory_space<vmem>>, vector<128x128xf32>
    %cst_14 = arith.constant dense<0.000000e+00> : vector<8x128xf32>
    %16 = tpu.matmul %14, %15, %cst_14 {dimension_numbers = #tpu.dot_dimension_numbers<[1], [0], [0], [1], [0, 0, 1, 1], [], []>} : vector<8x128xf32>, vector<128x128xf32>, vector<8x128xf32> -> vector<8x128xf32>
    %c0_15 = arith.constant 0 : index
    %c0_16 = arith.constant 0 : index
    %17 = vector.load %arg7[%c0_15, %c0_16] : memref<1x128xf32, #tpu.memory_space<vmem>>, vector<1x128xf32>
    %18 = vector.broadcast %17 : vector<1x128xf32> to vector<8x128xf32>
    %19 = arith.addf %16, %18 : vector<8x128xf32>
    %c0_17 = arith.constant 0 : index
    %c0_18 = arith.constant 0 : index
    %20 = vector.load %arg8[%c0_17, %c0_18] : memref<8x128xf32, #tpu.memory_space<vmem>>, vector<8x128xf32>
    tpu.vector_store %arg8[%c0_17, %c0_18], %19 {strides = array<i32>} : memref<8x128xf32, #tpu.memory_space<vmem>>, vector<8x128xf32>,
    return
  }
  func.func @transform_0(%arg0: i32) -> (i32, i32) {
    %c0_i32 = arith.constant 0 : i32
    %c0_i32_0 = arith.constant 0 : i32
    return %arg0, %c0_i32 : i32, i32
  }
  func.func @transform_1(%arg0: i32) -> (i32, i32) {
    %c0_i32 = arith.constant 0 : i32
    %c0_i32_0 = arith.constant 0 : i32
    %c0_i32_1 = arith.constant 0 : i32
    return %c0_i32, %c0_i32_0 : i32, i32
  }
  func.func @transform_2(%arg0: i32) -> (i32, i32) {
    %c0_i32 = arith.constant 0 : i32
    %c0_i32_0 = arith.constant 0 : i32
    %c0_i32_1 = arith.constant 0 : i32
    return %c0_i32, %c0_i32_0 : i32, i32
  }
  func.func @transform_3(%arg0: i32) -> (i32, i32) {
    %c0_i32 = arith.constant 0 : i32
    %c0_i32_0 = arith.constant 0 : i32
    %c0_i32_1 = arith.constant 0 : i32
    return %c0_i32, %c0_i32_0 : i32, i32
  }
  func.func @transform_4(%arg0: i32) -> (i32, i32) {
    %c0_i32 = arith.constant 0 : i32
    %c0_i32_0 = arith.constant 0 : i32
    %c0_i32_1 = arith.constant 0 : i32
    return %c0_i32, %c0_i32_0 : i32, i32
  }
  func.func @transform_5(%arg0: i32) -> (i32, i32) {
    %c0_i32 = arith.constant 0 : i32
    %c0_i32_0 = arith.constant 0 : i32
    %c0_i32_1 = arith.constant 0 : i32
    return %c0_i32, %c0_i32_0 : i32, i32
  }
  func.func @transform_6(%arg0: i32) -> (i32, i32) {
    %c0_i32 = arith.constant 0 : i32
    %c0_i32_0 = arith.constant 0 : i32
    %c0_i32_1 = arith.constant 0 : i32
    return %c0_i32, %c0_i32_0 : i32, i32
  }
  func.func @transform_7(%arg0: i32) -> (i32, i32) {
    %c0_i32 = arith.constant 0 : i32
    %c0_i32_0 = arith.constant 0 : i32
    return %arg0, %c0_i32 : i32, i32
  }
}

</mosaic_0001>

<bundles_post_ra>
// kernel: actor_forward.1
= control target key start
LH: loop header
LB: loop body
LE: loop exit
PB: predicated region body
PF: predicated region fallthrough
CT: control target
= control target key end

     0   :  { %12 = vsyncpa [#allocation3], 0  ;;  %s692_s0 = inlined_call_operand.hbm [shape: f32[8,16], index: 0, kind: input, shape index: {}]   ;;  %s693_s1 = inlined_call_operand.hbm [shape: f32[16,128], index: 1, kind: input, shape index: {}]   ;;  %s694_s2 = inlined_call_operand.vmem [shape: f32[1,128], index: 2, kind: input, shape index: {}]   ;;  %s695_s3 = inlined_call_operand.hbm [shape: f32[128,128], index: 3, kind: input, shape index: {}]   ;;  %s696_s4 = inlined_call_operand.vmem [shape: f32[1,128], index: 4, kind: input, shape index: {}]   ;;  %s697_s5 = inlined_call_operand.hbm [shape: f32[128,128], index: 5, kind: input, shape index: {}]   ;;  %s698_s6 = inlined_call_operand.vmem [shape: f32[1,128], index: 6, kind: input, shape index: {}]   ;;  %s699_s7 = inlined_call_operand.vmem [shape: f32[8,128], index: 7, kind: output, shape index: {}]  }
   0x1   :  { %13 = vsyncpa [#allocation5], 0 }
   0x2   :  { %14 = vsyncpa [#allocation8], 0  ;;  %s571_s24 = smov [#allocation4]  }
   0x3   :  { %s30_s25 = sshll.u32 %s571_s24, 4  ;;  %s31_s25 = int_to_ptr.vmem [resolvable:$true] %s30_s25 }
   0x4   :  { %s493_s26 = scalar_lea.vmem %s31_s25, 256  ;;  %p498_p1 = scmp.lt.s32.totalorder %s31_s25, %s31_s25 }
   0x5   :  { %p494_p0 = scmp.ne.s32.totalorder %s31_s25, %s493_s26  ;;  %p499_p2 = scmp.lt.s32.totalorder %s493_s26, %s493_s26 }
   0x7   :  { %p500_p3 = por %p499_p2, %p498_p1 }
   0x9   :  { %p501_p4 = pnand %p500_p3, %p494_p0 }
   0xb   :  { %504 = shalt.err (!%p501_p4)
}
   0xc   :  { %s572_s27 = smov 128   ;;  %s573_s28 = smov 8  }
   0xd   :  { %36 = dma.hbm_to_vmem [thread:$0]  %s693_s1, 256, %s31_s25, [#allocation5], %s572_s27, %s572_s27, %s573_s28  }
   0xe   :  { %s574_s8 = smov [#allocation2]   ;;  %s575_s10 = smov [#allocation6]  }
   0xf   :  { %s21_s9 = sshll.u32 %s574_s8, 4  ;;  %s44_s11 = sshll.u32 %s575_s10, 4  ;;  %s22_s9 = int_to_ptr.vmem [resolvable:$true] %s21_s9  ;;  %s45_s11 = int_to_ptr.vmem [resolvable:$true] %s44_s11 }
  0x10   :  { %s513_s12 = scalar_lea.vmem %s22_s9, 128  ;;  %p518_p6 = scmp.lt.s32.totalorder %s22_s9, %s22_s9 }
  0x11   :  { %p514_p5 = scmp.ne.s32.totalorder %s22_s9, %s513_s12  ;;  %p519_p7 = scmp.lt.s32.totalorder %s513_s12, %s513_s12 }
  0x13   :  { %p520_p8 = por %p519_p7, %p518_p6 }
  0x15   :  { %p521_p9 = pnand %p520_p8, %p514_p5 }
  0x17   :  { %524 = shalt.err (!%p521_p9)
}
  0x18   :  { %24 = dma.hbm_to_vmem [thread:$0]  %s692_s0, 128, %s22_s9, [#allocation3]  }
  0x19   :  { %s533_s15 = scalar_lea.vmem %s45_s11, 2048  ;;  %p538_p11 = scmp.lt.s32.totalorder %s45_s11, %s45_s11 }
  0x1a   :  { %p534_p10 = scmp.ne.s32.totalorder %s45_s11, %s533_s15  ;;  %p539_p12 = scmp.lt.s32.totalorder %s533_s15, %s533_s15 }
  0x1c   :  { %p540_p13 = por %p539_p12, %p538_p11 }
  0x1e   :  { %p541_p0 = pnand %p540_p13, %p534_p10 }
  0x20   :  { %544 = shalt.err (!%p541_p0)
}
  0x21   :  { %50 = dma.hbm_to_vmem [thread:$0]  %s695_s3, 2048, %s45_s11, [#allocation5], %s572_s27, %s572_s27, %s573_s28  }
  0x22   :  { %s576_s17 = smov [#allocation7]  }
  0x23   :  { %s58_s18 = sshll.u32 %s576_s17, 4  ;;  %s59_s18 = int_to_ptr.vmem [resolvable:$true] %s58_s18 }
  0x24   :  { %s553_s19 = scalar_lea.vmem %s59_s18, 2048  ;;  %p558_p2 = scmp.lt.s32.totalorder %s59_s18, %s59_s18 }
  0x25   :  { %p554_p1 = scmp.ne.s32.totalorder %s59_s18, %s553_s19  ;;  %p559_p3 = scmp.lt.s32.totalorder %s553_s19, %s553_s19 }
  0x27   :  { %p560_p4 = por %p559_p3, %p558_p2 }
  0x29   :  { %p561_p5 = pnand %p560_p4, %p554_p1 }
  0x2b   :  { %564 = shalt.err (!%p561_p5)
}
  0x2c   :  { %64 = dma.hbm_to_vmem [thread:$0]  %s697_s5, 2048, %s59_s18, [#allocation8], %s572_s27, %s572_s27, %s573_s28  }
  0x2d   :  { %565 = dma.done.wait [#allocation3], 128  }
  0x2e   :  { %566 = vsyncadd [#allocation3], 4294967168 }
  0x2f   :  { %567 = dma.done.wait [#allocation5], 2304  }
  0x30   :  { %568 = vsyncadd [#allocation5], 4294964992 }
  0x31   :  { %569 = dma.done.wait [#allocation8], 2048  }
  0x32   :  { %570 = vsyncadd [#allocation8], 4294965248  ;;  %v577_v0 = vmov 0.0   ;;  %vm578_vm0 = vmmov 0   ;;  %v81_v1 = vld [vmem:[#allocation4 + $0x8] sm:$0xff]  ;;  %v80_v2 = vld [vmem:[#allocation4] sm:$0xff] }
  0x33   :  { %400 = vmatprep.subr.mxu0 %v577_v0  ;;  %404 = vmatprep.mubr.msk.f32.mxu0 %vm578_vm0, %v577_v0  ;;  %v79_v3 = vld [vmem:[#allocation2] sm:$0xff]  ;;  %vm89_vm1 = vcmask 130048   ;;  %v179_v4 = vld [vmem:[#allocation6 + $0x78] sm:$0xff]  ;;  %v178_v5 = vld [vmem:[#allocation6 + $0x70] sm:$0xff] }
  0x34   :  { %407 = vmatprep.subr.mxu1 %v577_v0  ;;  %439 = vmatprep.mubr.msk.f32.mxu1 %vm578_vm0, %v577_v0  ;;  %v177_v6 = vld [vmem:[#allocation6 + $0x68] sm:$0xff]  ;;  %v176_v7 = vld [vmem:[#allocation6 + $0x60] sm:$0xff]  ;;  %v175_v8 = vld [vmem:[#allocation6 + $0x58] sm:$0xff] }
  0x35   :  { %401 = vmatpush3.msra.mxu0 %v81_v1  ;;  %408 = vmatpush3.msra.mxu1 %v179_v4  ;;  %v174_v9 = vld [vmem:[#allocation6 + $0x50] sm:$0xff]  ;;  %v173_v10 = vld [vmem:[#allocation6 + $0x48] sm:$0xff]  ;;  %v172_v11 = vld [vmem:[#allocation6 + $0x40] sm:$0xff] }
  0x36   :  { %402 = vmatprep.subr.mxu0 %v577_v0  ;;  %409 = vmatprep.subr.mxu1 %v577_v0  ;;  %v171_v12 = vld [vmem:[#allocation6 + $0x38] sm:$0xff]  ;;  %v170_v13 = vld [vmem:[#allocation6 + $0x30] sm:$0xff]  ;;  %v169_v14 = vld [vmem:[#allocation6 + $0x28] sm:$0xff] }
  0x37   :  { %403 = vmatpush3.msra.mxu0 %v80_v2  ;;  %410 = vmatpush3.msra.mxu1 %v178_v5  ;;  %v168_v15 = vld [vmem:[#allocation6 + $0x20] sm:$0xff]  ;;  %v167_v16 = vld [vmem:[#allocation6 + $0x18] sm:$0xff]  ;;  %v166_v17 = vld [vmem:[#allocation6 + $0x10] sm:$0xff] }
  0x38   :  { %405 = vmatmul.mubr.msk.f32.vlgmr.msra.gmra.mxu0 %vm89_vm1, %v79_v3  ;;  %411 = vmatprep.subr.mxu1 %v577_v0  ;;  %v165_v18 = vld [vmem:[#allocation6 + $0x8] sm:$0xff]  ;;  %v164_v19 = vld [vmem:[#allocation6] sm:$0xff]  ;;  %v273_v20 = vld [vmem:[#allocation7 + $0x78] sm:$0xff] }
  0x39   :  { %442 = vmatprep.subr.mxu0 %v577_v0  ;;  %412 = vmatpush3.msra.mxu1 %v177_v6  ;;  %v272_v21 = vld [vmem:[#allocation7 + $0x70] sm:$0xff]  ;;  %v271_v22 = vld [vmem:[#allocation7 + $0x68] sm:$0xff]  ;;  %v270_v23 = vld [vmem:[#allocation7 + $0x60] sm:$0xff] }
  0x3a   :  { %474 = vmatprep.mubr.msk.f32.mxu0 %vm578_vm0, %v577_v0  ;;  %413 = vmatprep.subr.mxu1 %v577_v0  ;;  %v269_v24 = vld [vmem:[#allocation7 + $0x58] sm:$0xff]  ;;  %v268_v25 = vld [vmem:[#allocation7 + $0x50] sm:$0xff]  ;;  %v267_v26 = vld [vmem:[#allocation7 + $0x48] sm:$0xff] }
  0x3b   :  { %414 = vmatpush3.msra.mxu1 %v176_v7  ;;  %443 = vmatpush3.msra.mxu0 %v273_v20  ;;  %v266_v27 = vld [vmem:[#allocation7 + $0x40] sm:$0xff]  ;;  %v265_v28 = vld [vmem:[#allocation7 + $0x38] sm:$0xff]  ;;  %v264_v29 = vld [vmem:[#allocation7 + $0x30] sm:$0xff] }
  0x3c   :  { %415 = vmatprep.subr.mxu1 %v577_v0  ;;  %444 = vmatprep.subr.mxu0 %v577_v0  ;;  %v263_v30 = vld [vmem:[#allocation7 + $0x28] sm:$0xff]  ;;  %v262_v31 = vld [vmem:[#allocation7 + $0x20] sm:$0xff]  ;;  %v261_v32 = vld [vmem:[#allocation7 + $0x18] sm:$0xff] }
  0x3d   :  { %416 = vmatpush3.msra.mxu1 %v175_v8  ;;  %445 = vmatpush3.msra.mxu0 %v272_v21  ;;  %v359_v33 = vld [vmem:[%s694_s2] ss:$0 sm:$0xff]  ;;  %v260_v38 = vld [vmem:[#allocation7 + $0x10] sm:$0xff]  ;;  %v258_v40 = vld [vmem:[#allocation7] sm:$0xff] }
  0x3e   :  { %417 = vmatprep.subr.mxu1 %v577_v0  ;;  %446 = vmatprep.subr.mxu0 %v577_v0  ;;  %v259_v39 = vld [vmem:[#allocation7 + $0x8] sm:$0xff] }
  0x3f   :  { %418 = vmatpush3.msra.mxu1 %v174_v9  ;;  %447 = vmatpush3.msra.mxu0 %v271_v22  ;;  %v361_v41 = vld [vmem:[%s696_s4] ss:$0 sm:$0xff] }
  0x40   :  { %419 = vmatprep.subr.mxu1 %v577_v0  ;;  %448 = vmatprep.subr.mxu0 %v577_v0  ;;  %v362_v46 = vld [vmem:[%s698_s6] ss:$0 sm:$0xff] }
  0x41   :  { %420 = vmatpush3.msra.mxu1 %v173_v10  ;;  %449 = vmatpush3.msra.mxu0 %v270_v23 }
  0x42   :  { %421 = vmatprep.subr.mxu1 %v577_v0  ;;  %450 = vmatprep.subr.mxu0 %v577_v0 }
  0x43   :  { %422 = vmatpush3.msra.mxu1 %v172_v11  ;;  %451 = vmatpush3.msra.mxu0 %v269_v24 }
  0x44   :  { %423 = vmatprep.subr.mxu1 %v577_v0  ;;  %452 = vmatprep.subr.mxu0 %v577_v0 }
  0x45   :  { %424 = vmatpush3.msra.mxu1 %v171_v12  ;;  %453 = vmatpush3.msra.mxu0 %v268_v25 }
  0x46   :  { %425 = vmatprep.subr.mxu1 %v577_v0  ;;  %454 = vmatprep.subr.mxu0 %v577_v0 }
  0x47   :  { %426 = vmatpush3.msra.mxu1 %v170_v13  ;;  %455 = vmatpush3.msra.mxu0 %v267_v26 }
  0x48   :  { %427 = vmatprep.subr.mxu1 %v577_v0  ;;  %456 = vmatprep.subr.mxu0 %v577_v0 }
  0x49   :  { %428 = vmatpush3.msra.mxu1 %v169_v14  ;;  %457 = vmatpush3.msra.mxu0 %v266_v27 }
  0x4a   :  { %429 = vmatprep.subr.mxu1 %v577_v0  ;;  %458 = vmatprep.subr.mxu0 %v577_v0 }
  0x4b   :  { %430 = vmatpush3.msra.mxu1 %v168_v15  ;;  %459 = vmatpush3.msra.mxu0 %v265_v28 }
  0x4c   :  { %431 = vmatprep.subr.mxu1 %v577_v0  ;;  %460 = vmatprep.subr.mxu0 %v577_v0 }
  0x4d   :  { %432 = vmatpush3.msra.mxu1 %v167_v16  ;;  %461 = vmatpush3.msra.mxu0 %v264_v29 }
  0x4e   :  { %433 = vmatprep.subr.mxu1 %v577_v0  ;;  %462 = vmatprep.subr.mxu0 %v577_v0 }
  0x4f   :  { %434 = vmatpush3.msra.mxu1 %v166_v17  ;;  %463 = vmatpush3.msra.mxu0 %v263_v30 }
  0x50   :  { %435 = vmatprep.subr.mxu1 %v577_v0  ;;  %464 = vmatprep.subr.mxu0 %v577_v0 }
  0x51   :  { %436 = vmatpush3.msra.mxu1 %v165_v18  ;;  %465 = vmatpush3.msra.mxu0 %v262_v31 }
  0x52   :  { %437 = vmatprep.subr.mxu1 %v577_v0  ;;  %466 = vmatprep.subr.mxu0 %v577_v0 }
  0x53   :  { %438 = vmatpush3.msra.mxu1 %v164_v19  ;;  %467 = vmatpush3.msra.mxu0 %v261_v32 }
  0x54   :  { %468 = vmatprep.subr.mxu0 %v577_v0 }
  0x55   :  { %469 = vmatpush3.msra.mxu0 %v260_v38 }
  0x56   :  { %470 = vmatprep.subr.mxu0 %v577_v0 }
  0x57   :  { %471 = vmatpush3.msra.mxu0 %v259_v39 }
  0x58   :  { %472 = vmatprep.subr.mxu0 %v577_v0 }
  0x59   :  { %473 = vmatpush3.msra.mxu0 %v258_v40 }
  0xf8   :  { %v159_v34 = vpop.f32.mrf.mxu0 }
  0xf9   :  { %v160_v35 = vadd.f32 %v359_v33, %v159_v34 }
  0xfa   :  { %v406_v36 = vpop.f32.mrf.mxu0 }
  0xfb   :  { %v163_v37 = vmax.f32 %v160_v35, 0.0 }
  0xfd   :  { %440 = vmatmul.mubr.f32.vlgmr.msra.gmra.mxu1 %v163_v37 }
 0x1bd   :  { %v253_v42 = vpop.f32.mrf.mxu1 }
 0x1be   :  { %v254_v43 = vadd.f32 %v361_v41, %v253_v42 }
 0x1bf   :  { %v441_v44 = vpop.f32.mrf.mxu1 }
 0x1c0   :  { %v257_v45 = vmax.f32 %v254_v43, 0.0 }
 0x1c2   :  { %475 = vmatmul.mubr.f32.vlgmr.msra.gmra.mxu0 %v257_v45 }
 0x282   :  { %v347_v47 = vpop.f32.mrf.mxu0 }
 0x283   :  { %v348_v48 = vadd.f32 %v362_v46, %v347_v47 }
 0x284   :  { %v476_v49 = vpop.f32.mrf.mxu0 }
 0x285   :  { %351 = vst [vmem:[%s699_s7] sm:$0xff] %v348_v48 }
 0x286   :  { %356 = vsyncpa [#allocation3], 1 }
 0x287   :  { %357 = vsyncpa [#allocation5], 1 }
 0x288   :  { %358 = vsyncpa [#allocation8], 1 }

</bundles_post_ra>
